<compile_context>
chip_gen: v5e
topology: v5e:2x2
jax: 0.10.0
libtpu: 0.0.40
codegen_flags: <defaults>
</compile_context>

<pallas_src>
import functools

import jax
import jax.numpy as jnp
from jax.experimental import pallas as pl
from jax.experimental.pallas import tpu as pltpu

_LANE = 128


def _bic_kernel(alpha_ref, beta_ref, x_ref, o_ref, *, extra, col_start, need_mask):
    """alpha_ref/beta_ref: SMEM (1,) f32 scalars.  x_ref/o_ref: VMEM (TB, TC) tiles."""
    x = x_ref[...]
    alpha = alpha_ref[0].astype(x.dtype)
    beta = beta_ref[0].astype(x.dtype)
    scaled = alpha * x + beta

    if need_mask:
        j = pl.program_id(1)

        @pl.when(j == 0)
        def _():
            # Boundary tile: some of its columns are still "old" classes.
            col = col_start + jax.lax.broadcasted_iota(jnp.int32, x.shape, 1)
            o_ref[...] = jnp.where(col >= extra, scaled, x).astype(o_ref.dtype)

        @pl.when(j != 0)
        def _():
            o_ref[...] = scaled.astype(o_ref.dtype)
    else:
        o_ref[...] = scaled.astype(o_ref.dtype)


def bic_forward(logits, alpha, beta, num_new_cls):
    """logits: (B, C) float array.  alpha, beta: shape-(1,) float32 params."""
    B, C = logits.shape
    if num_new_cls <= 0:
        return logits
    num_new_cls = min(num_new_cls, C)
    extra = C - num_new_cls

    # Column slab actually touched: [col_start, C), col_start is 128-aligned.
    col_start = (extra // _LANE) * _LANE
    W = C - col_start

    # Column tile: multiple of 128 (lane dense) such that col_start % TC == 0
    # (keeps the block-index mapping exact); full C when the class dim is tiny.
    if C <= _LANE:
        TC = C
    else:
        TC = _LANE
        w_aligned = pl.cdiv(W, _LANE) * _LANE
        while TC * 2 <= min(w_aligned, 1024) and col_start % (TC * 2) == 0:
            TC *= 2

    # Batch tile: multiple of the sublane packing (8 for 4-byte, 16 for 2-byte
    # dtypes), sized for ~2 MiB blocks (4 double-buffered copies ~8 MiB VMEM).
    itemsize = jnp.dtype(logits.dtype).itemsize
    sub = 16 if itemsize <= 2 else 8
    target_rows = max(sub, (2 * 1024 * 1024) // (TC * itemsize))
    target_rows = max(sub, (target_rows // sub) * sub)
    TB = B if B <= target_rows else target_rows

    col_block0 = col_start // TC
    grid = (pl.cdiv(B, TB), pl.cdiv(W, TC))
    need_mask = extra > col_start

    kernel = functools.partial(
        _bic_kernel, extra=extra, col_start=col_start, need_mask=need_mask
    )
    block_spec = pl.BlockSpec((TB, TC), lambda i, j: (i, col_block0 + j))

    return pl.pallas_call(
        kernel,
        out_shape=jax.ShapeDtypeStruct((B, C), logits.dtype),
        grid=grid,
        in_specs=[
            pl.BlockSpec(memory_space=pltpu.MemorySpace.SMEM),  # alpha
            pl.BlockSpec(memory_space=pltpu.MemorySpace.SMEM),  # beta
            block_spec,                                         # logits (new cols)
        ],
        out_specs=block_spec,
        # Output shares the buffer with `logits`: untouched (old-class) columns
        # pass through with zero extra HBM traffic.
        input_output_aliases={2: 0},
        compiler_params=pltpu.CompilerParams(
            dimension_semantics=("parallel", "arbitrary"),
        ),
        cost_estimate=pl.CostEstimate(
            flops=2 * B * W,
            transcendentals=0,
            bytes_accessed=2 * B * W * itemsize,
        ),
    )(alpha, beta, logits)


if __name__ == "__main__":
    # Deterministic parameter init, mirroring BiC.__init__:
    #   alpha = ones(1) * 0.75, beta = ones(1) * 0.001
    alpha = jnp.ones((1,), dtype=jnp.float32) * 0.75
    beta = jnp.ones((1,), dtype=jnp.float32) * 0.001

    key = jax.random.PRNGKey(0)

    # --- Test 1: small demo shape (12 old + 4 new classes), full-width block.
    num_new_cls = 4
    B, C = 2, 16
    logits = jax.random.normal(key, (B, C), dtype=jnp.float32)
    extra = C - num_new_cls
    ref = jnp.concatenate(
        [logits[:, :extra], alpha * logits[:, extra:] + beta], axis=1
    )
    out = jax.block_until_ready(bic_forward(logits, alpha, beta, num_new_cls))
    assert out.shape == (B, C) and out.dtype == logits.dtype
    assert jnp.allclose(out, ref, atol=1e-6), "mismatch vs reference (test 1)"

    # --- Test 2: exercises the aligned column-slab + boundary-mask path
    # (col_start = 512, only columns [512, 640) touched; cols [0, 512) aliased).
    num_new_cls2 = 100
    B2, C2 = 256, 640
    key2 = jax.random.PRNGKey(1)
    logits2 = jax.random.normal(key2, (B2, C2), dtype=jnp.float32)
    extra2 = C2 - num_new_cls2
    ref2 = jnp.concatenate(
        [logits2[:, :extra2], alpha * logits2[:, extra2:] + beta], axis=1
    )
    out2 = jax.block_until_ready(bic_forward(logits2, alpha, beta, num_new_cls2))
    assert out2.shape == (B2, C2) and out2.dtype == logits2.dtype
    assert jnp.allclose(out2, ref2, atol=1e-6), "mismatch vs reference (test 2)"

    print("KERNEL_OK")
</pallas_src>

<mosaic_0001>
module attributes {stable_mosaic.version = 11 : i64} {
  func.func @_bic_kernel(%arg0: i32, %arg1: i32, %arg2: memref<1xf32, #tpu.memory_space<smem>>, %arg3: memref<1xf32, #tpu.memory_space<smem>>, %arg4: memref<2x16xf32, #tpu.memory_space<vmem>>, %arg5: memref<2x16xf32, #tpu.memory_space<vmem>>) attributes {dimension_semantics = [#tpu.dimension_semantics<parallel>, #tpu.dimension_semantics<arbitrary>], iteration_bounds = array<i64: 1, 1>, scalar_prefetch = 0 : i64, scratch_operands = 0 : i64, tpu.core_type = #tpu.core_type<tc>, window_params = [{transform_indices = @transform_0, window_bounds = array<i64: 1>}, {transform_indices = @transform_1, window_bounds = array<i64: 1>}, {transform_indices = @transform_2, window_bounds = array<i64: 2, 16>}, {transform_indices = @transform_3, window_bounds = array<i64: 2, 16>}]} {
    %c0 = arith.constant 0 : index
    %c0_0 = arith.constant 0 : index
    %0 = vector.load %arg4[%c0, %c0_0] : memref<2x16xf32, #tpu.memory_space<vmem>>, vector<2x16xf32>
    %c0_1 = arith.constant 0 : index
    %1 = memref.load %arg2[%c0_1] : memref<1xf32, #tpu.memory_space<smem>>
    %c0_2 = arith.constant 0 : index
    %2 = memref.load %arg3[%c0_2] : memref<1xf32, #tpu.memory_space<smem>>
    %3 = vector.broadcast %1 : f32 to vector<2x16xf32>
    %4 = arith.mulf %3, %0 : vector<2x16xf32>
    %5 = vector.broadcast %2 : f32 to vector<2x16xf32>
    %6 = arith.addf %4, %5 : vector<2x16xf32>
    %c0_i32 = arith.constant 0 : i32
    %7 = arith.cmpi eq, %arg1, %c0_i32 : i32
    %8 = arith.extui %7 : i1 to i32
    %c0_i32_3 = arith.constant 0 : i32
    %9 = arith.cmpi ne, %8, %c0_i32_3 : i32
    scf.if %9 {
      %13 = tpu.iota {dimensions = array<i32: 1>} : vector<2x16xi32>
      %c0_i32_6 = arith.constant 0 : i32
      %14 = vector.broadcast %c0_i32_6 : i32 to vector<2x16xi32>
      %15 = arith.addi %14, %13 : vector<2x16xi32>
      %c12_i32 = arith.constant 12 : i32
      %16 = vector.broadcast %c12_i32 : i32 to vector<2x16xi32>
      %17 = arith.cmpi sge, %15, %16 : vector<2x16xi32>
      %18 = arith.select %17, %6, %0 : vector<2x16xi1>, vector<2x16xf32>
      %c0_7 = arith.constant 0 : index
      %c0_8 = arith.constant 0 : index
      %19 = vector.load %arg5[%c0_7, %c0_8] : memref<2x16xf32, #tpu.memory_space<vmem>>, vector<2x16xf32>
      tpu.vector_store %arg5[%c0_7, %c0_8], %18 {strides = array<i32>} : memref<2x16xf32, #tpu.memory_space<vmem>>, vector<2x16xf32>,
    } else {
    }
    %c0_i32_4 = arith.constant 0 : i32
    %10 = arith.cmpi ne, %arg1, %c0_i32_4 : i32
    %11 = arith.extui %10 : i1 to i32
    %c0_i32_5 = arith.constant 0 : i32
    %12 = arith.cmpi ne, %11, %c0_i32_5 : i32
    scf.if %12 {
      %c0_6 = arith.constant 0 : index
      %c0_7 = arith.constant 0 : index
      %13 = vector.load %arg5[%c0_6, %c0_7] : memref<2x16xf32, #tpu.memory_space<vmem>>, vector<2x16xf32>
      tpu.vector_store %arg5[%c0_6, %c0_7], %6 {strides = array<i32>} : memref<2x16xf32, #tpu.memory_space<vmem>>, vector<2x16xf32>,
    } else {
    }
    return
  }
  func.func @transform_0(%arg0: i32, %arg1: i32) -> i32 {
    %c0_i32 = arith.constant 0 : i32
    %c0_i32_0 = arith.constant 0 : i32
    return %c0_i32 : i32
  }
  func.func @transform_1(%arg0: i32, %arg1: i32) -> i32 {
    %c0_i32 = arith.constant 0 : i32
    %c0_i32_0 = arith.constant 0 : i32
    return %c0_i32 : i32
  }
  func.func @transform_2(%arg0: i32, %arg1: i32) -> (i32, i32) {
    %c0_i32 = arith.constant 0 : i32
    %0 = arith.addi %c0_i32, %arg1 : i32
    %c0_i32_0 = arith.constant 0 : i32
    return %arg0, %0 : i32, i32
  }
  func.func @transform_3(%arg0: i32, %arg1: i32) -> (i32, i32) {
    %c0_i32 = arith.constant 0 : i32
    %0 = arith.addi %c0_i32, %arg1 : i32
    %c0_i32_0 = arith.constant 0 : i32
    return %arg0, %0 : i32, i32
  }
}

</mosaic_0001>

<bundles_post_ra>
// kernel: tpu_custom_call.1
= control target key start
LH: loop header
LB: loop body
LE: loop exit
PB: predicated region body
PF: predicated region fallthrough
CT: control target
= control target key end

     0   :  { %10 = vsyncpa [#allocation5], 0  ;;  %s159_s0 = inlined_call_operand.<no memory space> [shape: f32[1], index: 0, kind: input, shape index: {}]   ;;  %s160_s1 = inlined_call_operand.<no memory space> [shape: f32[1], index: 1, kind: input, shape index: {}]   ;;  %s161_s2 = inlined_call_operand.hbm [shape: f32[2,16], index: 2, kind: input, shape index: {}, may-alias: {2,3}]   ;;  %s162_s3 = inlined_call_operand.hbm [shape: f32[2,16], index: 3, kind: output, shape index: {}, may-alias: {2,3}]  }
   0x1   :  { %11 = vsyncpa [#allocation6], 0  ;;  %s21_s14 = sshll.u32 %s161_s2, 4  ;;  %s125_s15 = smov [#allocation4]   ;;  %s22_s14 = int_to_ptr.hbm [resolvable:$true] %s21_s14 }
   0x2   :  { %s23_s16 = sshll.u32 %s125_s15, 4  ;;  %s24_s16 = int_to_ptr.vmem [resolvable:$true] %s23_s16 }
   0x3   :  { %26 = dma.hbm_to_vmem [thread:$0]  %s22_s14, 32, %s24_s16, [#allocation5]  }
   0x4   :  { %121 = dma.done.wait [#allocation5], 32  }
   0x5   :  { %122 = vsyncadd [#allocation5], 4294967264  ;;  %v42_v0 = vlaneseq  ;;  %v34_v1 = vstv %s159_s0  ;;  %v31_v3 = vld [vmem:[#allocation4] sm:$0x3]  ;;  %v36_v4 = vstv %s160_s1  ;;  %s126_s2 = smov [#allocation7]   ;;  %s61_s24 = sshll.u32 %s162_s3, 4  ;;  %s62_s24 = int_to_ptr.hbm [resolvable:$true] %s61_s24 }
   0x6   :  { %v35_v5 = vmul.f32 %v34_v1, %v31_v3  ;;  %s59_s21 = sshll.u32 %s126_s2, 4  ;;  %vm46_vm1 = vcmask 123904   ;;  %s60_s21 = int_to_ptr.vmem [resolvable:$true] %s59_s21 }
   0x7   :  { %v43_v2 = vand.u32 127, %v42_v0 }
   0x8   :  { %v37_v6 = vadd.f32 %v36_v4, %v35_v5 }
   0x9   :  { %vm44_vm0 = vcmp.ge.s32.totalorder %v43_v2, 12 }
   0xa   :  { %v45_v7 = vsel %vm44_vm0, %v37_v6, %v31_v3 }
   0xb   :  { %47 = vst.msk [vmem:[#allocation7] sm:$0x3] %vm46_vm1, %v45_v7 }
   0xc   :  { %64 = dma.vmem_to_hbm [thread:$0]  %s60_s21, 32, %s62_s24, [#allocation6]  }
   0xd   :  { %123 = dma.done.wait [#allocation6], 32  }
   0xe   :  { %124 = vsyncadd [#allocation6], 4294967264 }
   0xf   :  { %69 = vsyncpa [#allocation5], 1 }
  0x10   :  { %70 = vsyncpa [#allocation6], 1 }

</bundles_post_ra>
